<compile_context>
chip_gen: v7x
topology: tpu7x:2x2x1
jax: 0.10.0
libtpu: 0.0.40
codegen_flags: <defaults>
</compile_context>

<pallas_src>
import jax
import jax.numpy as jnp
from jax.experimental import pallas as pl
from jax.experimental.pallas import tpu as pltpu


def _hbm_copy_kernel(x_ref, o_ref, sem):
    # Single whole-array HBM->HBM DMA: no VMEM round-trip, no vector slots used.
    cp = pltpu.make_async_copy(x_ref, o_ref, sem)
    cp.start()
    cp.wait()


def unsqueeze(x: jax.Array, dim: int) -> jax.Array:
    """torch.Tensor.unsqueeze(dim) semantics (negative dims allowed)."""
    nd = x.ndim
    if not (-(nd + 1) <= dim <= nd):
        raise ValueError(f"dim {dim} out of range for input of ndim {nd}")
    if dim < 0:
        dim = dim + nd + 1
    out_shape = x.shape[:dim] + (1,) + x.shape[dim:]

    # Degenerate cases where a DMA copy is pointless / ill-formed: pure metadata reshape.
    if x.size == 0 or x.ndim == 0:
        return jnp.reshape(x, out_shape)

    # Identity copy of the input bytes, same shape in and out, entirely in HBM.
    y = pl.pallas_call(
        _hbm_copy_kernel,
        out_shape=jax.ShapeDtypeStruct(x.shape, x.dtype),
        in_specs=[pl.BlockSpec(memory_space=pl.ANY)],
        out_specs=pl.BlockSpec(memory_space=pl.ANY),
        scratch_shapes=[pltpu.SemaphoreType.DMA(())],
    )(x)

    # Insert the size-1 axis as a free row-major metadata reshape.
    return jnp.reshape(y, out_shape)


class Unsqueeze:
    """Mirror of the PyTorch nn.Module."""

    def __init__(self, dim: int):
        self.dim = dim

    def __call__(self, x: jax.Array) -> jax.Array:
        return unsqueeze(x, self.dim)


if __name__ == "__main__":
    key = jax.random.PRNGKey(0)
    # Small NCHW-style input consistent with a conv-pipeline utility module.
    x = jax.random.normal(key, (2, 4, 16, 16), dtype=jnp.float32)

    # Unsqueeze(dim=1): (2, 4, 16, 16) -> (2, 1, 4, 16, 16)
    module = Unsqueeze(1)
    out = module(x)
    jax.block_until_ready(out)

    ref = jnp.expand_dims(x, 1)
    assert out.shape == ref.shape, (out.shape, ref.shape)
    assert out.dtype == ref.dtype
    assert bool(jnp.array_equal(out, ref))

    # Negative dim (like torch's x.unsqueeze(-1)): (2, 4, 16, 16) -> (2, 4, 16, 16, 1)
    out_neg = Unsqueeze(-1)(x)
    jax.block_until_ready(out_neg)
    ref_neg = jnp.expand_dims(x, -1)
    assert out_neg.shape == ref_neg.shape
    assert bool(jnp.array_equal(out_neg, ref_neg))

    # Leading dim: (2, 4, 16, 16) -> (1, 2, 4, 16, 16)
    out0 = Unsqueeze(0)(x)
    jax.block_until_ready(out0)
    assert bool(jnp.array_equal(out0, jnp.expand_dims(x, 0)))

    print("KERNEL_OK")
</pallas_src>

<mosaic_0001>
module attributes {stable_mosaic.version = 11 : i64} {
  func.func @_hbm_copy_kernel(%arg0: memref<2x4x16x16xf32, #tpu.memory_space<any>>, %arg1: memref<2x4x16x16xf32, #tpu.memory_space<any>>, %arg2: memref<!tpu.dma_semaphore, #tpu.memory_space<semaphore_mem>>) attributes {dimension_semantics = [], scalar_prefetch = 0 : i64, scratch_operands = 1 : i64, tpu.core_type = #tpu.core_type<tc>} {
    tpu.enqueue_dma source(%arg0 : memref<2x4x16x16xf32, #tpu.memory_space<any>>) target(%arg1 : memref<2x4x16x16xf32, #tpu.memory_space<any>>) target_semaphore(%arg2 : memref<!tpu.dma_semaphore, #tpu.memory_space<semaphore_mem>>)
    tpu.wait_dma2 semaphore(%arg2 : memref<!tpu.dma_semaphore, #tpu.memory_space<semaphore_mem>>) src(%arg0 : memref<2x4x16x16xf32, #tpu.memory_space<any>>) dst(%arg1 : memref<2x4x16x16xf32, #tpu.memory_space<any>>)
    return
  }
}

</mosaic_0001>

<bundles_post_ra>
// kernel: tpu_custom_call.1
= control target key start
LH: loop header
LB: loop body
LE: loop exit
PB: predicated region body
PF: predicated region fallthrough
CT: control target
= control target key end

     0   :  { %s36_s6 = smov [#allocation2]   ;;  %s37_s7 = smov [#allocation3]   ;;  %s55_s0 = inlined_call_operand.hbm [shape: f32[2,4,16,16], index: 0, kind: input, shape index: {}]   ;;  %s56_s1 = inlined_call_operand.hbm [shape: f32[2,4,16,16], index: 1, kind: output, shape index: {}]  }
   0x1   :  { %s38_s8 = smov 0  }
   0x2   :  { %18 = dma.general %s55_s0, 2048, %s56_s1, %s36_s6, %s37_s7, [#allocation4], %s38_s8, 0  }
   0x3   :  { %34 = dma.done.wait [#allocation2], 2048 }
   0x4   :  { %35 = vsyncadd [#allocation2], 4294965248 }
   0x5   :  { %24 = vsyncmov [#allocation2] }
   0x8   :  { %s25_s13 = vpop.sfrf %24 }
   0x9   :  { %p30_p0 = scmp.ne.s32.totalorder %s25_s13, 0 }
   0xb   :  { %29 = shalt.err (%p30_p0)  }

</bundles_post_ra>
